<compile_context>
chip_gen: v6e
topology: v6e:2x2x1
jax: 0.10.0
libtpu: 0.0.40
codegen_flags: <defaults>
</compile_context>

<pallas_src>
import functools

import jax
import jax.numpy as jnp
from jax import lax
from jax.experimental import pallas as pl
from jax.experimental.pallas import tpu as pltpu


# --------------------------------------------------------------------------
# Pallas kernel: full forward for Bt batch elements per grid step.
# Lane-dense layout: spatial axis (HW, padded to HWp) in lanes, channels in
# sublanes. All matmuls hit the MXU; rolls hit the XLU.
# --------------------------------------------------------------------------
def _attention_kernel(x_ref, w1_ref, b1_ref, w2t_ref, b2_ref, mask_ref,
                      wl1_ref, bl1_ref, wl2_ref, bl2_ref, out_ref,
                      *, W, HW, HW_pad, Bt):
    inv_hw = 1.0 / float(HW)
    lane_ids = lax.broadcasted_iota(jnp.int32, (1, Bt), 1)

    gap = None                                             # becomes (C, Bt)
    for b in range(Bt):                                    # static unroll over the batch block
        x = x_ref[b]                                       # (C, HWp)

        # --- spatial branch: fused (1x1 conv + BN) -> ReLU6 ------------- MXU/VPU
        h = jnp.dot(w1_ref[...], x, preferred_element_type=jnp.float32)   # (mid, HWp)
        h = jnp.clip(h + b1_ref[...], 0.0, 6.0)

        # --- 3x3 conv (mid -> 1, pad=1): one MXU matmul + 9 (1,HWp) rolls
        # P[t, j] = sum_c w2[c, t] * h[c, j]
        p = jnp.dot(w2t_ref[...], h, preferred_element_type=jnp.float32)  # (9, HWp)
        logit = b2_ref[...]                                # (1, 1) -> broadcasts
        for t in range(9):
            dy, dx = t // 3 - 1, t % 3 - 1
            s = dy * W + dx                                # flat offset of this tap's source
            row = p[t:t + 1, :]                            # (1, HWp)
            if s != 0:
                # pltpu.roll follows jnp.roll: rolling by -s aligns source
                # position j = i + s with output position i.
                row = pltpu.roll(row, (-s) % HW_pad, axis=1)
            logit = logit + row * mask_ref[t:t + 1, :]     # zero out-of-image taps
        spatial_w = jax.nn.sigmoid(logit)                  # (1, HWp)

        xs = x * spatial_w                                 # (C, HWp)
        out_ref[b] = xs                                    # stash; channel-rescaled below

        # GAP column of this image -> lane b of the (C, Bt) gap matrix.
        col = jnp.sum(xs, axis=1, keepdims=True) * inv_hw                  # (C, 1)
        contrib = col * (lane_ids == b).astype(jnp.float32)                # (C, Bt)
        gap = contrib if gap is None else gap + contrib

    # --- channel branch, batched over the Bt images ---------------------- MXU
    z = jnp.dot(wl1_ref[...], gap, preferred_element_type=jnp.float32)     # (hid, Bt)
    z = jnp.clip(z + bl1_ref[...], 0.0, 6.0)
    cw = jnp.dot(wl2_ref[...], z, preferred_element_type=jnp.float32)      # (C, Bt)
    cw = jax.nn.sigmoid(cw + bl2_ref[...])

    for b in range(Bt):
        out_ref[b] = out_ref[b] * cw[:, b:b + 1]           # per-image channel rescale


# --------------------------------------------------------------------------
# Per-tap validity masks for a zero-padded 3x3 conv over an (H, W) grid,
# stored as one lane-dense (9, HW_pad) slab.
# --------------------------------------------------------------------------
def _build_tap_masks(H, W, HW_pad):
    HW = H * W
    row = jnp.repeat(jnp.arange(H), W)          # (HW,)
    col = jnp.tile(jnp.arange(W), H)            # (HW,)
    masks = []
    for ky in range(3):
        for kx in range(3):
            dy, dx = ky - 1, kx - 1
            valid = ((row + dy >= 0) & (row + dy < H) &
                     (col + dx >= 0) & (col + dx < W))
            masks.append(valid.astype(jnp.float32))
    m = jnp.stack(masks, axis=0)                # (9, HW)
    if HW_pad != HW:
        m = jnp.pad(m, ((0, 0), (0, HW_pad - HW)))
    return m


def _choose_bt(B, C, HW_pad, io_budget_bytes):
    """Largest per-step batch block that fits the VMEM I/O budget."""
    per_image = C * HW_pad * 4                  # one f32 (C, HWp) slab
    # budget covers: x + out blocks double-buffered (4x) + ~1x live intermediates
    bt = max(1, io_budget_bytes // (5 * per_image))
    bt = min(bt, B)
    if B >= 2:
        bt = min(bt, max(1, B // 2))            # keep >= 2 grid steps (v7x megacore)
    while B % bt:                               # avoid partial trailing blocks
        bt -= 1
    return bt


# --------------------------------------------------------------------------
# Wrapper: NCHW in / NCHW out. NCHW flattens directly to (B, C, HW) — no
# wrapper transposes; HW is zero-padded up to a multiple of 128.
# --------------------------------------------------------------------------
def simplified_attention_pallas(x_nchw, params, *, io_budget_bytes=16 << 20):
    B, C, H, W = x_nchw.shape
    HW = H * W
    HW_pad = ((HW + 127) // 128) * 128
    mid = params["w1k"].shape[0]
    hid = params["wl1k"].shape[0]

    x = x_nchw.reshape(B, C, HW)
    if HW_pad != HW:
        x = jnp.pad(x, ((0, 0), (0, 0), (0, HW_pad - HW)))

    masks = _build_tap_masks(H, W, HW_pad)
    Bt = _choose_bt(B, C, HW_pad, io_budget_bytes)

    kernel = functools.partial(_attention_kernel, W=W, HW=HW, HW_pad=HW_pad, Bt=Bt)

    full = lambda shape: pl.BlockSpec(shape, lambda b: (0,) * len(shape))
    out = pl.pallas_call(
        kernel,
        out_shape=jax.ShapeDtypeStruct((B, C, HW_pad), jnp.float32),
        grid=(B // Bt,),
        in_specs=[
            pl.BlockSpec((Bt, C, HW_pad), lambda b: (b, 0, 0)),  # x (Bt images)
            full((mid, C)),      # fused 1x1-conv + BN weight
            full((mid, 1)),      # fused 1x1-conv + BN bias
            full((9, mid)),      # 3x3 taps, tap-major (t = ky*3 + kx)
            full((1, 1)),        # 3x3-conv bias
            full((9, HW_pad)),   # tap validity masks
            full((hid, C)),      # linear1 W
            full((hid, 1)),      # linear1 b
            full((C, hid)),      # linear2 W
            full((C, 1)),        # linear2 b
        ],
        out_specs=pl.BlockSpec((Bt, C, HW_pad), lambda b: (b, 0, 0)),
        compiler_params=pltpu.CompilerParams(
            dimension_semantics=("parallel",),
            vmem_limit_bytes=48 << 20),
    )(x, params["w1k"], params["b1k"], params["w2tk"], params["b2k"], masks,
      params["wl1k"], params["bl1k"], params["wl2k"], params["bl2k"])

    return out[:, :, :HW].reshape(B, C, H, W)


# --------------------------------------------------------------------------
# Pure-JAX reference (NCHW, mirrors the PyTorch forward in eval mode).
# --------------------------------------------------------------------------
def reference(x, p):
    hp = lax.Precision.HIGHEST
    h = lax.conv_general_dilated(
        x, p["w1_conv"], (1, 1), "VALID",
        dimension_numbers=("NCHW", "OIHW", "NCHW"), precision=hp)
    h = h + p["b1"][None, :, None, None]
    h = h * p["bn_scale"][None, :, None, None] + p["bn_bias"][None, :, None, None]
    h = jnp.clip(h, 0.0, 6.0)
    sw = lax.conv_general_dilated(
        h, p["w2_conv"], (1, 1), "SAME",
        dimension_numbers=("NCHW", "OIHW", "NCHW"), precision=hp)
    sw = jax.nn.sigmoid(sw + p["b2"][None, :, None, None])
    xs = x * sw
    gap = jnp.mean(xs, axis=(2, 3))                               # (B, C)
    cw = jnp.clip(gap @ p["wl1_t"].T + p["bl1"], 0.0, 6.0)
    cw = jax.nn.sigmoid(cw @ p["wl2_t"].T + p["bl2"])
    return xs * cw[:, :, None, None]


# --------------------------------------------------------------------------
def make_params(C, reduction=8):
    mid = max(8, C // 4)
    hid = max(4, C // reduction)
    key = jax.random.PRNGKey(0)
    k1, k2, k3, k4 = jax.random.split(key, 4)

    # PyTorch-shaped parameters (deterministic synthetic init).
    w1_conv = jax.random.normal(k1, (mid, C, 1, 1), jnp.float32) * jnp.sqrt(2.0 / mid)
    b1 = jnp.zeros((mid,), jnp.float32)
    w2_conv = jax.random.normal(k2, (1, mid, 3, 3), jnp.float32) * jnp.sqrt(2.0 / 9.0)
    b2 = jnp.zeros((1,), jnp.float32)
    gamma, beta = jnp.ones((mid,), jnp.float32), jnp.zeros((mid,), jnp.float32)
    rmean, rvar, eps = jnp.zeros((mid,)), jnp.ones((mid,)), 1e-5
    bn_scale = gamma / jnp.sqrt(rvar + eps)
    bn_bias = beta - rmean * bn_scale
    wl1_t = jax.random.normal(k3, (hid, C), jnp.float32) * 0.01
    bl1 = jnp.zeros((hid,), jnp.float32)
    wl2_t = jax.random.normal(k4, (C, hid), jnp.float32) * 0.01
    bl2 = jnp.zeros((C,), jnp.float32)

    params = dict(w1_conv=w1_conv, b1=b1, w2_conv=w2_conv, b2=b2,
                  bn_scale=bn_scale, bn_bias=bn_bias,
                  wl1_t=wl1_t, bl1=bl1, wl2_t=wl2_t, bl2=bl2)

    # Kernel-layout parameters (lane-dense; eval-mode BN folded into 1x1 conv).
    params.update(
        w1k=w1_conv[:, :, 0, 0] * bn_scale[:, None],          # (mid, C)
        b1k=(b1 * bn_scale + bn_bias).reshape(mid, 1),         # (mid, 1)
        w2tk=jnp.transpose(w2_conv[0].reshape(mid, 9)),        # (9, mid), t = ky*3+kx
        b2k=b2.reshape(1, 1),
        wl1k=wl1_t,                                            # (hid, C)
        bl1k=bl1.reshape(hid, 1),
        wl2k=wl2_t,                                            # (C, hid)
        bl2k=bl2.reshape(C, 1),
    )
    return params


if __name__ == "__main__":
    C, H, W = 4, 16, 16
    params = make_params(C)
    # B=2 exercises the Bt=1 / 2-step grid path; B=4 exercises Bt=2 batching.
    for B in (2, 4):
        x = jax.random.normal(jax.random.PRNGKey(0), (B, C, H, W), jnp.float32)
        out = jax.block_until_ready(simplified_attention_pallas(x, params))
        ref = jax.block_until_ready(reference(x, params))
        assert out.shape == (B, C, H, W)
        err = float(jnp.max(jnp.abs(out - ref)))
        assert jnp.allclose(out, ref, atol=1e-4, rtol=1e-4), f"B={B} max err {err}"
    print("KERNEL_OK")
</pallas_src>

<mosaic_0001>
module attributes {stable_mosaic.version = 11 : i64} {
  func.func @_attention_kernel(%arg0: i32, %arg1: memref<1x4x256xf32, #tpu.memory_space<vmem>>, %arg2: memref<8x4xf32, #tpu.memory_space<vmem>>, %arg3: memref<8x1xf32, #tpu.memory_space<vmem>>, %arg4: memref<9x8xf32, #tpu.memory_space<vmem>>, %arg5: memref<1x1xf32, #tpu.memory_space<vmem>>, %arg6: memref<9x256xf32, #tpu.memory_space<vmem>>, %arg7: memref<4x4xf32, #tpu.memory_space<vmem>>, %arg8: memref<4x1xf32, #tpu.memory_space<vmem>>, %arg9: memref<4x4xf32, #tpu.memory_space<vmem>>, %arg10: memref<4x1xf32, #tpu.memory_space<vmem>>, %arg11: memref<1x4x256xf32, #tpu.memory_space<vmem>>) attributes {dimension_semantics = [#tpu.dimension_semantics<parallel>], iteration_bounds = array<i64: 2>, scalar_prefetch = 0 : i64, scratch_operands = 0 : i64, tpu.core_type = #tpu.core_type<tc>, window_params = [{transform_indices = @transform_0, window_bounds = array<i64: 1, 4, 256>}, {pipeline_mode = #tpu.pipeline_mode<synchronous>, transform_indices = @transform_1, window_bounds = array<i64: 8, 4>}, {pipeline_mode = #tpu.pipeline_mode<synchronous>, transform_indices = @transform_2, window_bounds = array<i64: 8, 1>}, {pipeline_mode = #tpu.pipeline_mode<synchronous>, transform_indices = @transform_3, window_bounds = array<i64: 9, 8>}, {pipeline_mode = #tpu.pipeline_mode<synchronous>, transform_indices = @transform_4, window_bounds = array<i64: 1, 1>}, {pipeline_mode = #tpu.pipeline_mode<synchronous>, transform_indices = @transform_5, window_bounds = array<i64: 9, 256>}, {pipeline_mode = #tpu.pipeline_mode<synchronous>, transform_indices = @transform_6, window_bounds = array<i64: 4, 4>}, {pipeline_mode = #tpu.pipeline_mode<synchronous>, transform_indices = @transform_7, window_bounds = array<i64: 4, 1>}, {pipeline_mode = #tpu.pipeline_mode<synchronous>, transform_indices = @transform_8, window_bounds = array<i64: 4, 4>}, {pipeline_mode = #tpu.pipeline_mode<synchronous>, transform_indices = @transform_9, window_bounds = array<i64: 4, 1>}, {transform_indices = @transform_10, window_bounds = array<i64: 1, 4, 256>}]} {
    %0 = tpu.iota {dimensions = array<i32: 1>} : vector<1x1xi32>
    %c0 = arith.constant 0 : index
    %c0_0 = arith.constant 0 : index
    %c0_1 = arith.constant 0 : index
    %1 = vector.load %arg1[%c0, %c0_0, %c0_1] : memref<1x4x256xf32, #tpu.memory_space<vmem>>, vector<1x4x256xf32>
    %2 = vector.shape_cast %1 : vector<1x4x256xf32> to vector<4x256xf32>
    %c0_2 = arith.constant 0 : index
    %c0_3 = arith.constant 0 : index
    %3 = vector.load %arg2[%c0_2, %c0_3] : memref<8x4xf32, #tpu.memory_space<vmem>>, vector<8x4xf32>
    %cst = arith.constant dense<0.000000e+00> : vector<8x256xf32>
    %4 = tpu.matmul %3, %2, %cst {dimension_numbers = #tpu.dot_dimension_numbers<[1], [0], [0], [1], [0, 0, 1, 1], [], []>} : vector<8x4xf32>, vector<4x256xf32>, vector<8x256xf32> -> vector<8x256xf32>
    %c0_4 = arith.constant 0 : index
    %c0_5 = arith.constant 0 : index
    %5 = vector.load %arg3[%c0_4, %c0_5] : memref<8x1xf32, #tpu.memory_space<vmem>>, vector<8x1xf32>
    %6 = vector.broadcast %5 : vector<8x1xf32> to vector<8x256xf32>
    %7 = arith.addf %4, %6 : vector<8x256xf32>
    %cst_6 = arith.constant 0.000000e+00 : f32
    %cst_7 = arith.constant 6.000000e+00 : f32
    %8 = vector.broadcast %cst_6 : f32 to vector<8x256xf32>
    %9 = arith.maximumf %8, %7 : vector<8x256xf32>
    %10 = vector.broadcast %cst_7 : f32 to vector<8x256xf32>
    %11 = arith.minimumf %10, %9 : vector<8x256xf32>
    %c0_8 = arith.constant 0 : index
    %c0_9 = arith.constant 0 : index
    %12 = vector.load %arg4[%c0_8, %c0_9] : memref<9x8xf32, #tpu.memory_space<vmem>>, vector<9x8xf32>
    %cst_10 = arith.constant dense<0.000000e+00> : vector<9x256xf32>
    %13 = tpu.matmul %12, %11, %cst_10 {dimension_numbers = #tpu.dot_dimension_numbers<[1], [0], [0], [1], [0, 0, 1, 1], [], []>} : vector<9x8xf32>, vector<8x256xf32>, vector<9x256xf32> -> vector<9x256xf32>
    %c0_11 = arith.constant 0 : index
    %c0_12 = arith.constant 0 : index
    %14 = vector.load %arg5[%c0_11, %c0_12] : memref<1x1xf32, #tpu.memory_space<vmem>>, vector<1x1xf32>
    %15 = vector.extract_strided_slice %13 {offsets = [0, 0], sizes = [1, 256], strides = [1, 1]} : vector<9x256xf32> to vector<1x256xf32>
    %c17_i32 = arith.constant 17 : i32
    %16 = tpu.dynamic_rotate %15 by %c17_i32 dim 1 : vector<1x256xf32>, i32 -> vector<1x256xf32>
    %c0_13 = arith.constant 0 : index
    %c0_14 = arith.constant 0 : index
    %17 = vector.load %arg6[%c0_13, %c0_14] : memref<9x256xf32, #tpu.memory_space<vmem>>, vector<1x256xf32>
    %18 = arith.mulf %16, %17 : vector<1x256xf32>
    %19 = vector.broadcast %14 : vector<1x1xf32> to vector<1x256xf32>
    %20 = arith.addf %19, %18 : vector<1x256xf32>
    %21 = vector.extract_strided_slice %13 {offsets = [1, 0], sizes = [1, 256], strides = [1, 1]} : vector<9x256xf32> to vector<1x256xf32>
    %c16_i32 = arith.constant 16 : i32
    %22 = tpu.dynamic_rotate %21 by %c16_i32 dim 1 : vector<1x256xf32>, i32 -> vector<1x256xf32>
    %c1 = arith.constant 1 : index
    %c0_15 = arith.constant 0 : index
    %23 = vector.load %arg6[%c1, %c0_15] : memref<9x256xf32, #tpu.memory_space<vmem>>, vector<1x256xf32>
    %24 = arith.mulf %22, %23 : vector<1x256xf32>
    %25 = arith.addf %20, %24 : vector<1x256xf32>
    %26 = vector.extract_strided_slice %13 {offsets = [2, 0], sizes = [1, 256], strides = [1, 1]} : vector<9x256xf32> to vector<1x256xf32>
    %c15_i32 = arith.constant 15 : i32
    %27 = tpu.dynamic_rotate %26 by %c15_i32 dim 1 : vector<1x256xf32>, i32 -> vector<1x256xf32>
    %c2 = arith.constant 2 : index
    %c0_16 = arith.constant 0 : index
    %28 = vector.load %arg6[%c2, %c0_16] : memref<9x256xf32, #tpu.memory_space<vmem>>, vector<1x256xf32>
    %29 = arith.mulf %27, %28 : vector<1x256xf32>
    %30 = arith.addf %25, %29 : vector<1x256xf32>
    %31 = vector.extract_strided_slice %13 {offsets = [3, 0], sizes = [1, 256], strides = [1, 1]} : vector<9x256xf32> to vector<1x256xf32>
    %c1_i32 = arith.constant 1 : i32
    %32 = tpu.dynamic_rotate %31 by %c1_i32 dim 1 : vector<1x256xf32>, i32 -> vector<1x256xf32>
    %c3 = arith.constant 3 : index
    %c0_17 = arith.constant 0 : index
    %33 = vector.load %arg6[%c3, %c0_17] : memref<9x256xf32, #tpu.memory_space<vmem>>, vector<1x256xf32>
    %34 = arith.mulf %32, %33 : vector<1x256xf32>
    %35 = arith.addf %30, %34 : vector<1x256xf32>
    %36 = vector.extract_strided_slice %13 {offsets = [4, 0], sizes = [1, 256], strides = [1, 1]} : vector<9x256xf32> to vector<1x256xf32>
    %c4 = arith.constant 4 : index
    %c0_18 = arith.constant 0 : index
    %37 = vector.load %arg6[%c4, %c0_18] : memref<9x256xf32, #tpu.memory_space<vmem>>, vector<1x256xf32>
    %38 = arith.mulf %36, %37 : vector<1x256xf32>
    %39 = arith.addf %35, %38 : vector<1x256xf32>
    %40 = vector.extract_strided_slice %13 {offsets = [5, 0], sizes = [1, 256], strides = [1, 1]} : vector<9x256xf32> to vector<1x256xf32>
    %c255_i32 = arith.constant 255 : i32
    %41 = tpu.dynamic_rotate %40 by %c255_i32 dim 1 : vector<1x256xf32>, i32 -> vector<1x256xf32>
    %c5 = arith.constant 5 : index
    %c0_19 = arith.constant 0 : index
    %42 = vector.load %arg6[%c5, %c0_19] : memref<9x256xf32, #tpu.memory_space<vmem>>, vector<1x256xf32>
    %43 = arith.mulf %41, %42 : vector<1x256xf32>
    %44 = arith.addf %39, %43 : vector<1x256xf32>
    %45 = vector.extract_strided_slice %13 {offsets = [6, 0], sizes = [1, 256], strides = [1, 1]} : vector<9x256xf32> to vector<1x256xf32>
    %c241_i32 = arith.constant 241 : i32
    %46 = tpu.dynamic_rotate %45 by %c241_i32 dim 1 : vector<1x256xf32>, i32 -> vector<1x256xf32>
    %c6 = arith.constant 6 : index
    %c0_20 = arith.constant 0 : index
    %47 = vector.load %arg6[%c6, %c0_20] : memref<9x256xf32, #tpu.memory_space<vmem>>, vector<1x256xf32>
    %48 = arith.mulf %46, %47 : vector<1x256xf32>
    %49 = arith.addf %44, %48 : vector<1x256xf32>
    %50 = vector.extract_strided_slice %13 {offsets = [7, 0], sizes = [1, 256], strides = [1, 1]} : vector<9x256xf32> to vector<1x256xf32>
    %c240_i32 = arith.constant 240 : i32
    %51 = tpu.dynamic_rotate %50 by %c240_i32 dim 1 : vector<1x256xf32>, i32 -> vector<1x256xf32>
    %c7 = arith.constant 7 : index
    %c0_21 = arith.constant 0 : index
    %52 = vector.load %arg6[%c7, %c0_21] : memref<9x256xf32, #tpu.memory_space<vmem>>, vector<1x256xf32>
    %53 = arith.mulf %51, %52 : vector<1x256xf32>
    %54 = arith.addf %49, %53 : vector<1x256xf32>
    %55 = vector.extract_strided_slice %13 {offsets = [8, 0], sizes = [1, 256], strides = [1, 1]} : vector<9x256xf32> to vector<1x256xf32>
    %c239_i32 = arith.constant 239 : i32
    %56 = tpu.dynamic_rotate %55 by %c239_i32 dim 1 : vector<1x256xf32>, i32 -> vector<1x256xf32>
    %c8 = arith.constant 8 : index
    %c0_22 = arith.constant 0 : index
    %57 = vector.load %arg6[%c8, %c0_22] : memref<9x256xf32, #tpu.memory_space<vmem>>, vector<1x256xf32>
    %58 = arith.mulf %56, %57 : vector<1x256xf32>
    %59 = arith.addf %54, %58 : vector<1x256xf32>
    %60 = arith.negf %59 : vector<1x256xf32>
    %61 = math.exp %60 : vector<1x256xf32>
    %cst_23 = arith.constant 1.000000e+00 : f32
    %62 = vector.broadcast %cst_23 : f32 to vector<1x256xf32>
    %63 = arith.addf %62, %61 : vector<1x256xf32>
    %64 = arith.divf %62, %63 : vector<1x256xf32>
    %65 = vector.broadcast %64 : vector<1x256xf32> to vector<4x256xf32>
    %66 = arith.mulf %2, %65 : vector<4x256xf32>
    %c0_24 = arith.constant 0 : index
    %c0_25 = arith.constant 0 : index
    %c0_26 = arith.constant 0 : index
    %67 = vector.load %arg11[%c0_24, %c0_25, %c0_26] : memref<1x4x256xf32, #tpu.memory_space<vmem>>, vector<1x4x256xf32>
    %68 = vector.shape_cast %67 : vector<1x4x256xf32> to vector<4x256xf32>
    %69 = vector.shape_cast %66 : vector<4x256xf32> to vector<1x4x256xf32>
    tpu.vector_store %arg11[%c0_24, %c0_25, %c0_26], %69 {strides = array<i32>} : memref<1x4x256xf32, #tpu.memory_space<vmem>>, vector<1x4x256xf32>,
    %cst_27 = arith.constant dense<0.000000e+00> : vector<4xf32>
    %70 = vector.multi_reduction <add>, %66, %cst_27 [1] : vector<4x256xf32> to vector<4xf32>
    %71 = vector.shape_cast %70 : vector<4xf32> to vector<4x1xf32>
    %cst_28 = arith.constant 3.906250e-03 : f32
    %72 = vector.broadcast %cst_28 : f32 to vector<4x1xf32>
    %73 = arith.mulf %71, %72 : vector<4x1xf32>
    %c0_i32 = arith.constant 0 : i32
    %74 = vector.broadcast %c0_i32 : i32 to vector<1x1xi32>
    %75 = arith.cmpi eq, %0, %74 : vector<1x1xi32>
    %76 = arith.extui %75 : vector<1x1xi1> to vector<1x1xi32>
    %77 = arith.sitofp %76 : vector<1x1xi32> to vector<1x1xf32>
    %78 = vector.broadcast %77 : vector<1x1xf32> to vector<4x1xf32>
    %79 = arith.mulf %73, %78 : vector<4x1xf32>
    %c0_29 = arith.constant 0 : index
    %c0_30 = arith.constant 0 : index
    %80 = vector.load %arg7[%c0_29, %c0_30] : memref<4x4xf32, #tpu.memory_space<vmem>>, vector<4x4xf32>
    %cst_31 = arith.constant dense<0.000000e+00> : vector<4x1xf32>
    %81 = tpu.matmul %80, %79, %cst_31 {dimension_numbers = #tpu.dot_dimension_numbers<[1], [0], [0], [1], [0, 0, 1, 1], [], []>} : vector<4x4xf32>, vector<4x1xf32>, vector<4x1xf32> -> vector<4x1xf32>
    %c0_32 = arith.constant 0 : index
    %c0_33 = arith.constant 0 : index
    %82 = vector.load %arg8[%c0_32, %c0_33] : memref<4x1xf32, #tpu.memory_space<vmem>>, vector<4x1xf32>
    %83 = arith.addf %81, %82 : vector<4x1xf32>
    %cst_34 = arith.constant 0.000000e+00 : f32
    %cst_35 = arith.constant 6.000000e+00 : f32
    %84 = vector.broadcast %cst_34 : f32 to vector<4x1xf32>
    %85 = arith.maximumf %84, %83 : vector<4x1xf32>
    %86 = vector.broadcast %cst_35 : f32 to vector<4x1xf32>
    %87 = arith.minimumf %86, %85 : vector<4x1xf32>
    %c0_36 = arith.constant 0 : index
    %c0_37 = arith.constant 0 : index
    %88 = vector.load %arg9[%c0_36, %c0_37] : memref<4x4xf32, #tpu.memory_space<vmem>>, vector<4x4xf32>
    %cst_38 = arith.constant dense<0.000000e+00> : vector<4x1xf32>
    %89 = tpu.matmul %88, %87, %cst_38 {dimension_numbers = #tpu.dot_dimension_numbers<[1], [0], [0], [1], [0, 0, 1, 1], [], []>} : vector<4x4xf32>, vector<4x1xf32>, vector<4x1xf32> -> vector<4x1xf32>
    %c0_39 = arith.constant 0 : index
    %c0_40 = arith.constant 0 : index
    %90 = vector.load %arg10[%c0_39, %c0_40] : memref<4x1xf32, #tpu.memory_space<vmem>>, vector<4x1xf32>
    %91 = arith.addf %89, %90 : vector<4x1xf32>
    %92 = arith.negf %91 : vector<4x1xf32>
    %93 = math.exp %92 : vector<4x1xf32>
    %cst_41 = arith.constant 1.000000e+00 : f32
    %94 = vector.broadcast %cst_41 : f32 to vector<4x1xf32>
    %95 = arith.addf %94, %93 : vector<4x1xf32>
    %96 = arith.divf %94, %95 : vector<4x1xf32>
    %c0_42 = arith.constant 0 : index
    %c0_43 = arith.constant 0 : index
    %c0_44 = arith.constant 0 : index
    %97 = vector.load %arg11[%c0_42, %c0_43, %c0_44] : memref<1x4x256xf32, #tpu.memory_space<vmem>>, vector<1x4x256xf32>
    %98 = vector.shape_cast %97 : vector<1x4x256xf32> to vector<4x256xf32>
    %99 = vector.broadcast %96 : vector<4x1xf32> to vector<4x256xf32>
    %100 = arith.mulf %98, %99 : vector<4x256xf32>
    %c0_45 = arith.constant 0 : index
    %c0_46 = arith.constant 0 : index
    %c0_47 = arith.constant 0 : index
    %101 = vector.load %arg11[%c0_45, %c0_46, %c0_47] : memref<1x4x256xf32, #tpu.memory_space<vmem>>, vector<1x4x256xf32>
    %102 = vector.shape_cast %101 : vector<1x4x256xf32> to vector<4x256xf32>
    %103 = vector.shape_cast %100 : vector<4x256xf32> to vector<1x4x256xf32>
    tpu.vector_store %arg11[%c0_45, %c0_46, %c0_47], %103 {strides = array<i32>} : memref<1x4x256xf32, #tpu.memory_space<vmem>>, vector<1x4x256xf32>,
    return
  }
  func.func @transform_0(%arg0: i32) -> (i32, i32, i32) {
    %c0_i32 = arith.constant 0 : i32
    %c0_i32_0 = arith.constant 0 : i32
    %c0_i32_1 = arith.constant 0 : i32
    return %arg0, %c0_i32, %c0_i32_0 : i32, i32, i32
  }
  func.func @transform_1(%arg0: i32) -> (i32, i32) {
    %c0_i32 = arith.constant 0 : i32
    %c0_i32_0 = arith.constant 0 : i32
    %c0_i32_1 = arith.constant 0 : i32
    return %c0_i32, %c0_i32_0 : i32, i32
  }
  func.func @transform_2(%arg0: i32) -> (i32, i32) {
    %c0_i32 = arith.constant 0 : i32
    %c0_i32_0 = arith.constant 0 : i32
    %c0_i32_1 = arith.constant 0 : i32
    return %c0_i32, %c0_i32_0 : i32, i32
  }
  func.func @transform_3(%arg0: i32) -> (i32, i32) {
    %c0_i32 = arith.constant 0 : i32
    %c0_i32_0 = arith.constant 0 : i32
    %c0_i32_1 = arith.constant 0 : i32
    return %c0_i32, %c0_i32_0 : i32, i32
  }
  func.func @transform_4(%arg0: i32) -> (i32, i32) {
    %c0_i32 = arith.constant 0 : i32
    %c0_i32_0 = arith.constant 0 : i32
    %c0_i32_1 = arith.constant 0 : i32
    return %c0_i32, %c0_i32_0 : i32, i32
  }
  func.func @transform_5(%arg0: i32) -> (i32, i32) {
    %c0_i32 = arith.constant 0 : i32
    %c0_i32_0 = arith.constant 0 : i32
    %c0_i32_1 = arith.constant 0 : i32
    return %c0_i32, %c0_i32_0 : i32, i32
  }
  func.func @transform_6(%arg0: i32) -> (i32, i32) {
    %c0_i32 = arith.constant 0 : i32
    %c0_i32_0 = arith.constant 0 : i32
    %c0_i32_1 = arith.constant 0 : i32
    return %c0_i32, %c0_i32_0 : i32, i32
  }
  func.func @transform_7(%arg0: i32) -> (i32, i32) {
    %c0_i32 = arith.constant 0 : i32
    %c0_i32_0 = arith.constant 0 : i32
    %c0_i32_1 = arith.constant 0 : i32
    return %c0_i32, %c0_i32_0 : i32, i32
  }
  func.func @transform_8(%arg0: i32) -> (i32, i32) {
    %c0_i32 = arith.constant 0 : i32
    %c0_i32_0 = arith.constant 0 : i32
    %c0_i32_1 = arith.constant 0 : i32
    return %c0_i32, %c0_i32_0 : i32, i32
  }
  func.func @transform_9(%arg0: i32) -> (i32, i32) {
    %c0_i32 = arith.constant 0 : i32
    %c0_i32_0 = arith.constant 0 : i32
    %c0_i32_1 = arith.constant 0 : i32
    return %c0_i32, %c0_i32_0 : i32, i32
  }
  func.func @transform_10(%arg0: i32) -> (i32, i32, i32) {
    %c0_i32 = arith.constant 0 : i32
    %c0_i32_0 = arith.constant 0 : i32
    %c0_i32_1 = arith.constant 0 : i32
    return %arg0, %c0_i32, %c0_i32_0 : i32, i32, i32
  }
}

</mosaic_0001>

<bundles_post_ra>
// kernel: tpu_custom_call.1
= control target key start
LH: loop header
LB: loop body
LE: loop exit
PB: predicated region body
PF: predicated region fallthrough
CT: control target
= control target key end

     0   :  { %s1558_s0 = inlined_call_operand.vmem [shape: f32[2,4,256], index: 0, kind: input, shape index: {}]   ;;  %s1559_s1 = inlined_call_operand.vmem [shape: f32[8,4], index: 1, kind: input, shape index: {}]   ;;  %s1560_s2 = inlined_call_operand.vmem [shape: f32[8,1], index: 2, kind: input, shape index: {}]   ;;  %s1561_s3 = inlined_call_operand.vmem [shape: f32[9,8], index: 3, kind: input, shape index: {}]   ;;  %s1562_s4 = inlined_call_operand.<no memory space> [shape: f32[1,1], index: 4, kind: input, shape index: {}]   ;;  %s1563_s5 = inlined_call_operand.vmem [shape: f32[9,256], index: 5, kind: input, shape index: {}]   ;;  %s1564_s6 = inlined_call_operand.vmem [shape: f32[4,4], index: 6, kind: input, shape index: {}]   ;;  %s1565_s7 = inlined_call_operand.vmem [shape: f32[4,1], index: 7, kind: input, shape index: {}]   ;;  %s1566_s8 = inlined_call_operand.vmem [shape: f32[4,4], index: 8, kind: input, shape index: {}]   ;;  %s1567_s9 = inlined_call_operand.vmem [shape: f32[4,1], index: 9, kind: input, shape index: {}]   ;;  %s1568_s10 = inlined_call_operand.hbm [shape: f32[2,4,256], index: 10, kind: output, shape index: {}]  }
   0x1   :  { %v15_v0 = vstv %s1562_s4 }
   0x2   :  { %16 = vst [vmem:[#allocation2] sm:$0x1] %v15_v0 }
   0x3   :  { %17 = vsyncpa [#allocation4], 0 }
   0x4   :  { %19 = vsyncpa [#allocation4 + $0x1], 0  ;;  %s1332_s15 = smov 0   ;;  %s1334_s16 = smov 0  }
   0x5   :  { %s1336_s17 = smov 0   ;;  %s1338_s18 = smov 0  }
   0x6 LB: > { %s1353_s4 = sadd.s32 4294967295, %s1259_s18   ;;  %s1084_s19 = sadd.s32 4294967294, %s1259_s18   ;;  %s1259_s18 = sphi %s1338_s18, %s1574_s18   ;;  %s1255_s17 = sphi %s1336_s17, %s1573_s17   ;;  %s1251_s16 = sphi %s1334_s16, %s1572_s16   ;;  %s1247_s15 = sphi %s1332_s15, %s1571_s15  }
   0x7   : > { %s1357_s20 = sadd.s32 1, %s1259_s18   ;;  %s247_s21 = sadd.s32 1, %s1255_s17 }
   0x8   : > { %s244_s22 = ssub.s32 %s1259_s18, %s1357_s20  ;;  %p257_p0 = scmp.ne.s32.totalorder %s1255_s17, %s1251_s16 }
   0x9   : > { %p245_p1 = scmp.eq.s32.totalorder %s244_s22, 0  ;;  %p258_p2 = scmp.eq.s32.totalorder %s1353_s4, 1 }
   0xa   : > { %p263_p3 = scmp.ne.s32.totalorder %s1251_s16, %s1247_s15  ;;  %p264_p4 = scmp.eq.s32.totalorder %s1084_s19, 1 }
   0xb   : > { %s1368_s23 = scalar_select %p245_p1, %s1255_s17, %s247_s21  }
   0xc   : > { %p1370_p5 = por %p258_p2, %p257_p0  ;;  %p1374_p6 = por %p264_p4, %p263_p3 }
   0xd   : > { %p1087_p7 = scmp.ge.s32.totalorder %s1259_s18, 1  ;;  %p317_p8 = scmp.lt.s32.totalorder %s1259_s18, 3 }
   0xf   : > { %p318_p9 = pnand %p1087_p7, %p317_p8 }
  0x10   : > { %p355_p10 = scmp.lt.s32.totalorder (!%p318_p9), %s1353_s4, 1  ;;  %s1263_s27 = smov (!%p318_p9), 17  }
  0x11   : > { %321 = sbr.rel (%p318_p9) target bundleno = 1334 (0x536), region = 60  ;;  %s1266_s30 = smov (!%p318_p9), 1  }
  0x12   : > { %s1267_s11 = smov (!%p318_p9), 127   ;;  %s1269_s13 = smov (!%p318_p9), 112  }
  0x13   : > { %s1270_s14 = smov (!%p318_p9), 111   ;;  %s352_s22 = sand.u32 (!%p318_p9), 1, %s1251_s16  }
  0x14   : > { %s1088_s26 = sshll.u32 (!%p318_p9), %s352_s22, 3  ;;  %s1273_s19 = smov (!%p318_p9), [#allocation3]  }
  0x15   : > { %s1203_s21 = sshll.u32 (!%p318_p9), %s1273_s19, 4  ;;  %s1204_s21 = int_to_ptr.vmem [resolvable:$false] %s1203_s21 }
  0x16   : > { %v1261_v1 = vmov 0.0   ;;  %v1262_v2 = vmov 0   ;;  %v364_v3 = vld [vmem:[%s1560_s2] sm:$0xff]  ;;  %s356_s28 = scalar_select %p355_p10, %s1353_s4, 1  ;;  %vm376_vm0 = vcmask 1043456   ;;  %vm372_vm1 = vcmask 31744  }
  0x17   : > { %445 = vmatprep.mubr.f32.mxu0 %v1261_v1  ;;  %1184 = vset.pattern.permute.xlu0 %v1262_v2  ;;  %v542_v4 = vld [vmem:[#allocation2] sm:$0x1]  ;;  %vm458_vm2 = vcmask 64512   ;;  %v457_v18 = vld [vmem:[%s1561_s3 + $0x8] sm:$0x1]  ;;  %v360_v36 = vlaneseq  ;;  %vm1271_vm11 = vmmov 0  }
  0x18   : > { %367 = vperm.xlu0 %1184, %v364_v3   ;;  %529 = vmatprep.mubr.f32.mxu1 %v1261_v1  ;;  %s1117_s29 = sshll.u32 %s356_s28, 3  ;;  %v363_v7 = vld [vmem:[%s1559_s1] sm:$0xff]  ;;  %s1264_s28 = smov 16  }
  0x19   : > { %1185 = vset.pattern.permute.xlu1 %v1262_v2  ;;  %s359_s12 = scalar_lea.vmem %s1558_s0, %s1117_s29  ;;  %v456_v17 = vld [vmem:[%s1561_s3] sm:$0xff]  ;;  %s1265_s29 = smov 15   ;;  %v1427_v38 = vshrl.u32 %v360_v36, 7  ;;  %v1429_v40 = vand.u32 127, %v360_v36 }
  0x1a   : > { %v1390_v5 = vld [vmem:[%s359_s12] sm:$0xff]  ;;  %s1268_s12 = smov 113  }
  0x1b   : > { %v371_v6 = vcombine.high %v1390_v5, %v1390_v5  ;;  %v550_v42 = vld [vmem:[%s1563_s5] ss:$8 sm:$0x3]  ;;  %v1435_v43 = vsub.s32 0, %v1427_v38  ;;  %vm547_vm3 = vcmp.lt.s32.totalorder %v1429_v40, 17  ;;  %v1439_v44 = vsub.s32 1, %v1427_v38 }
  0x1c   : > { %566 = vperm.xlu0 %1184, %v542_v4   ;;  %v1096_v46 = vld [vmem:[%s1563_s5 + $0x1] ss:$8 sm:$0x3]  ;;  %vm585_vm4 = vcmp.lt.s32.totalorder %v1429_v40, 16  ;;  %vm613_vm5 = vcmp.lt.s32.totalorder %v1429_v40, 15  ;;  %vm641_vm6 = vcmp.lt.s32.totalorder %v1429_v40, 1 }
  0x1d   : > { %1091 = vmatprep.subr.msk.mxu0 %vm376_vm0, %v371_v6  ;;  %v555_v47 = vrot.slane %v550_v42, %v1435_v43  ;;  %v559_v48 = vrot.slane %v550_v42, %v1439_v44  ;;  %v1097_v52 = vld [vmem:[%s1563_s5 + $0x2] ss:$8 sm:$0x3]  ;;  %v594_v53 = vrot.slane %v1096_v46, %v1435_v43  ;;  %v598_v54 = vrot.slane %v1096_v46, %v1439_v44  ;;  %v1098_v58 = vld [vmem:[%s1563_s5 + $0x3] ss:$8 sm:$0x3] }
  0x1e   : > { %1092 = vmatpush1.msk.msra.mxu0 %vm376_vm0, %v1390_v5  ;;  %v622_v61 = vrot.slane %v1097_v52, %v1435_v43  ;;  %v626_v62 = vrot.slane %v1097_v52, %v1439_v44  ;;  %v1099_v0 = vld [vmem:[%s1563_s5 + $0x4] ss:$8 sm:$0x3]  ;;  %vm692_vm7 = vcmp.lt.s32.totalorder %v1429_v40, 127  ;;  %vm720_vm8 = vcmp.lt.s32.totalorder %v1429_v40, 113 }
  0x1f   : > { %1093 = vmatmul.mubr.msk.f32.vlgmr.msra.gmra.mxu0 %vm372_vm1, %v363_v7  ;;  %1123 = vmatprep.subr.mxu0 %v1261_v1  ;;  %vm748_vm9 = vcmp.lt.s32.totalorder %v1429_v40, 112  ;;  %vm772_vm10 = vcmp.lt.s32.totalorder %v1429_v40, 111  ;;  %vm827_vm12 = vcmp.eq.s32.totalorder %v1429_v40, 0  ;;  %v832_v40 = vld [vmem:[%s1565_s7] sm:$0xf] }
  0x20   : > { %1125 = vmatprep.mubr.msk.f32.mxu0 %vm1271_vm11, %v1261_v1 }
  0x93   : > { %v368_v8 = vpop.permute.xlu0 %367 }
  0x97   : > { %v567_v35 = vpop.permute.xlu0 %566 }
  0x98   : > { %v572_v2 = vrot.slane %v567_v35, %v1435_v43 }
  0xdf   : > { %v447_v9 = vpop.f32.mrf.mxu0 }
  0xe0   : > { %v448_v10 = vadd.f32 %v447_v9, %v368_v8  ;;  %v654_v9 = vrot.slane %v1098_v58, %v1439_v44 }
  0xe1   : > { %v449_v11 = vpop.f32.mrf.mxu0 }
  0xe2   : > { %v450_v12 = vadd.f32 %v449_v11, %v368_v8  ;;  %v452_v13 = vmax.f32 %v448_v10, 0.0  ;;  %v650_v8 = vrot.slane %v1098_v58, %v1435_v43  ;;  %v667_v10 = vrot.slane %v1099_v0, %v1435_v43 }
  0xe3   : > { %v671_v11 = vrot.slane %v1099_v0, %v1439_v44 }
  0xe4   : > { %v453_v14 = vmax.f32 %v450_v12, 0.0  ;;  %v454_v16 = vmin.f32 %v452_v13, 6.0 }
  0xe6   : > { %v455_v15 = vmin.f32 %v453_v14, 6.0 }
  0xe8   : > { %495 = vmatprep.subr.mxu1 %v455_v15 }
  0xe9   : > { %496 = vmatpush1.msra.mxu1 %v454_v16 }
  0xea   : > { %1094 = vmatmul.mubr.msk.f32.vlgmr.msra.gmra.mxu1 %vm458_vm2, %v456_v17 }
  0xeb   : > { %535 = vmatprep.mubr.f32.mxu1 %v1261_v1 }
  0xee   : > { %1095 = vmatmul.mubr.msk.f32.gmra.mxu1 %vm458_vm2, %v457_v18 }
 0x1aa   : > { %v1409_v19 = vpop.f32.mrf.mxu1 }
 0x1ab   : > { %543 = vrot.lane.b32.xlu1 %v1409_v19, %s1263_s27  ;;  %v577_v20 = vrot.slane %v1409_v19, 1  ;;  %v605_v22 = vrot.slane %v1409_v19, 2  ;;  %v633_v24 = vrot.slane %v1409_v19, 3  ;;  %v684_v26 = vrot.slane %v1409_v19, 5 }
 0x1ac   : > { %v1413_v21 = vpop.f32.mrf.mxu1  ;;  %v712_v28 = vrot.slane %v1409_v19, 6  ;;  %v740_v30 = vrot.slane %v1409_v19, 7 }
 0x1ad   : > { %581 = vrot.lane.b32.xlu0 %v577_v20, %s1264_s28  ;;  %v578_v23 = vrot.slane %v1413_v21, 1  ;;  %v606_v25 = vrot.slane %v1413_v21, 2  ;;  %v634_v27 = vrot.slane %v1413_v21, 3  ;;  %v685_v29 = vrot.slane %v1413_v21, 5 }
 0x1ae   : > { %v713_v31 = vrot.slane %v1413_v21, 6  ;;  %v537_v32 = vpop.f32.mrf.mxu1  ;;  %v741_v33 = vrot.slane %v1413_v21, 7 }
 0x1af   : > { %545 = vrot.lane.b32.xlu1 %v1413_v21, %s1263_s27  ;;  %s1118_s27 = sshll.u32 %s1353_s4, 7  ;;  %s1205_s4 = scalar_lea.vmem %s1204_s21, 256 }
 0x1b0   : > { %v539_v34 = vpop.f32.mrf.mxu1 }
 0x1b1   : > { %609 = vrot.lane.b32.xlu0 %v605_v22, %s1265_s29 }
 0x1b3   : > { %583 = vrot.lane.b32.xlu1 %v578_v23, %s1264_s28  ;;  %s354_s28 = scalar_lea.vmem [#allocation3], %s1088_s26 }
 0x1b5   : > { %637 = vrot.lane.b32.xlu0 %v633_v24, %s1266_s30 }
 0x1b7   : > { %611 = vrot.lane.b32.xlu1 %v606_v25, %s1265_s29  ;;  %s1025_s29 = sshll.u32 %s354_s28, 4  ;;  %s1026_s29 = int_to_ptr.vmem [resolvable:$true] %s1025_s29 }
 0x1b8   : > { %p1206_p0 = scmp.lt.s32.totalorder %s1026_s29, %s1204_s21 }
 0x1b9   : > { %688 = vrot.lane.b32.xlu0 %v684_v26, %s1267_s11  ;;  %v1100_v26 = vld [vmem:[%s1563_s5 + $0x5] ss:$8 sm:$0x3] }
 0x1bb   : > { %639 = vrot.lane.b32.xlu1 %v634_v27, %s1266_s30  ;;  %v674_v27 = vmul.f32 %v667_v10, %v1409_v19  ;;  %v1102_v19 = vld [vmem:[%s1563_s5 + $0x7] ss:$8 sm:$0x3] }
 0x1bd   : > { %716 = vrot.lane.b32.xlu0 %v712_v28, %s1268_s12 }
 0x1bf   : > { %690 = vrot.lane.b32.xlu1 %v685_v29, %s1267_s11 }
 0x1c1   : > { %744 = vrot.lane.b32.xlu0 %v740_v30, %s1269_s13  ;;  %v675_v30 = vmul.f32 %v671_v11, %v1413_v21  ;;  %v678_v21 = vrot.slane %v674_v27, 4 }
 0x1c3   : > { %718 = vrot.lane.b32.xlu1 %v713_v31, %s1268_s12  ;;  %v679_v42 = vrot.slane %v675_v30, 4  ;;  %s1023_s12 = scalar_lea.hbm %s1568_s10, %s1118_s27 }
 0x1c5   : > { %768 = vrot.lane.b32.xlu0 %v537_v32, %s1270_s14  ;;  %v701_v32 = vrot.slane %v1100_v26, %v1435_v43 }
 0x1c7   : > { %746 = vrot.lane.b32.xlu1 %v741_v33, %s1269_s13  ;;  %v1101_v33 = vld [vmem:[%s1563_s5 + $0x6] ss:$8 sm:$0x3]  ;;  %s1011_s13 = scalar_lea.sflag [#allocation4], %s352_s22 }
 0x1c8   : > { %v733_v46 = vrot.slane %v1101_v33, %v1439_v44 }
 0x1cb   : > { %770 = vrot.lane.b32.xlu1 %v539_v34, %s1270_s14  ;;  %s1199_s14 = scalar_lea.vmem %s1026_s29, 128 }
 0x1cc   : > { %p1200_p11 = scmp.ne.s32.totalorder %s1026_s29, %s1199_s14  ;;  %p1207_p1 = scmp.lt.s32.totalorder %s1205_s4, %s1199_s14 }
 0x1ce   : > { %p1201_p12 = pnand %p1200_p11, %p1370_p5  ;;  %p1208_p2 = por %p1207_p1, %p1206_p0 }
 0x1d0   : > { %p1202_p13 = pneg %p1201_p12 }
 0x1d2   : > { %p1209_p3 = pnand %p1208_p2, %p1202_p13 }
 0x21d   : > { %v544_v37 = vpop.permute.xlu1 %543 }
 0x21f   : > { %v582_v39 = vpop.permute.xlu0 %581 }
 0x221   : > { %v546_v41 = vpop.permute.xlu1 %545 }
 0x222   : > { %v548_v50 = vsel %vm547_vm3, %v544_v37, %v546_v41  ;;  %v549_v51 = vsel %vm547_vm3, %v546_v41, %v544_v37  ;;  %v705_v37 = vrot.slane %v1100_v26, %v1439_v44 }
 0x223   : > { %v610_v45 = vpop.permute.xlu0 %609  ;;  %v562_v59 = vmul.f32 %v555_v47, %v549_v51  ;;  %v563_v60 = vmul.f32 %v559_v48, %v548_v50  ;;  %v757_v50 = vrot.slane %v1102_v19, %v1435_v43  ;;  %v761_v51 = vrot.slane %v1102_v19, %v1439_v44 }
 0x225   : > { %v584_v49 = vpop.permute.xlu1 %583  ;;  %v573_v12 = vadd.f32 %v572_v2, %v562_v59  ;;  %v574_v13 = vadd.f32 %v572_v2, %v563_v60 }
 0x226   : > { %v586_v56 = vsel %vm585_vm4, %v582_v39, %v584_v49  ;;  %v587_v57 = vsel %vm585_vm4, %v584_v49, %v582_v39 }
 0x227   : > { %v638_v55 = vpop.permute.xlu0 %637  ;;  %v601_v6 = vmul.f32 %v594_v53, %v587_v57  ;;  %v602_v7 = vmul.f32 %v598_v54, %v586_v56  ;;  %v1103_v56 = vld [vmem:[%s1563_s5 + $0x10] ss:$8 sm:$0x3] }
 0x228   : > { %v785_v0 = vrot.slane %v1103_v56, %v1439_v44 }
 0x229   : > { %v612_v63 = vpop.permute.xlu1 %611  ;;  %v603_v22 = vadd.f32 %v601_v6, %v573_v12  ;;  %v604_v23 = vadd.f32 %v602_v7, %v574_v13 }
 0x22a   : > { %v614_v3 = vsel %vm613_vm5, %v610_v45, %v612_v63  ;;  %v615_v4 = vsel %vm613_vm5, %v612_v63, %v610_v45  ;;  %v729_v45 = vrot.slane %v1101_v33, %v1435_v43  ;;  %v781_v63 = vrot.slane %v1103_v56, %v1435_v43 }
 0x22b   : > { %v629_v14 = vmul.f32 %v622_v61, %v615_v4  ;;  %v630_v15 = vmul.f32 %v626_v62, %v614_v3  ;;  %v689_v16 = vpop.permute.xlu0 %688 }
 0x22d   : > { %v640_v17 = vpop.permute.xlu1 %639  ;;  %v631_v28 = vadd.f32 %v629_v14, %v603_v22  ;;  %v632_v29 = vadd.f32 %v630_v15, %v604_v23 }
 0x22e   : > { %v642_v18 = vsel %vm641_vm6, %v638_v55, %v640_v17  ;;  %v643_v20 = vsel %vm641_vm6, %v640_v17, %v638_v55 }
 0x22f   : > { %v657_v24 = vmul.f32 %v650_v8, %v643_v20  ;;  %v658_v25 = vmul.f32 %v654_v9, %v642_v18  ;;  %v717_v36 = vpop.permute.xlu0 %716 }
 0x231   : > { %v691_v31 = vpop.permute.xlu1 %690  ;;  %v659_v34 = vadd.f32 %v657_v24, %v631_v28  ;;  %v660_v35 = vadd.f32 %v658_v25, %v632_v29 }
 0x232   : > { %v693_v39 = vsel %vm692_vm7, %v689_v16, %v691_v31  ;;  %v694_v41 = vsel %vm692_vm7, %v691_v31, %v689_v16 }
 0x233   : > { %v682_v52 = vadd.f32 %v678_v21, %v659_v34  ;;  %v683_v53 = vadd.f32 %v679_v42, %v660_v35  ;;  %v708_v54 = vmul.f32 %v701_v32, %v693_v39  ;;  %v709_v55 = vmul.f32 %v705_v37, %v694_v41  ;;  %v745_v57 = vpop.permute.xlu0 %744 }
 0x235   : > { %v719_v47 = vpop.permute.xlu1 %718  ;;  %v710_v2 = vadd.f32 %v708_v54, %v682_v52  ;;  %v711_v3 = vadd.f32 %v709_v55, %v683_v53  ;;  %v1272_v54 = vmov 839922192  }
 0x236   : > { %v721_v48 = vsel %vm720_vm8, %v717_v36, %v719_v47  ;;  %v722_v49 = vsel %vm720_vm8, %v719_v47, %v717_v36  ;;  %v1106_v36 = vsel %vm827_vm12, 1.0, %v1261_v1  ;;  %v1001_v55 = vunpack.c.l.s4 %v1272_v54 }
 0x237   : > { %v736_v58 = vmul.f32 %v729_v45, %v721_v48  ;;  %v737_v59 = vmul.f32 %v733_v46, %v722_v49  ;;  %v769_v9 = vpop.permute.xlu0 %768  ;;  %v911_v46 = vld [vmem:[%s1566_s8] sm:$0xf] }
 0x238   : > { %v1002_v56 = vunpack.c.0.s8 %v1001_v55 }
 0x239   : > { %v747_v60 = vpop.permute.xlu1 %746  ;;  %v738_v7 = vadd.f32 %v736_v58, %v710_v2  ;;  %v739_v8 = vadd.f32 %v737_v59, %v711_v3 }
 0x23a   : > { %v749_v61 = vsel %vm748_vm9, %v745_v57, %v747_v60  ;;  %v750_v62 = vsel %vm748_vm9, %v747_v60, %v745_v57  ;;  %v1005_v57 = vsub.s32 %v1002_v56, %v1427_v38 }
 0x23b   : > { %v764_v4 = vmul.f32 %v757_v50, %v749_v61  ;;  %v765_v6 = vmul.f32 %v761_v51, %v750_v62 }
 0x23d   : > { %v771_v10 = vpop.permute.xlu1 %770  ;;  %v766_v13 = vadd.f32 %v764_v4, %v738_v7  ;;  %v767_v14 = vadd.f32 %v765_v6, %v739_v8 }
 0x23e   : > { %v773_v11 = vsel %vm772_vm10, %v769_v9, %v771_v10  ;;  %v774_v12 = vsel %vm772_vm10, %v771_v10, %v769_v9 }
 0x23f   : > { %v788_v15 = vmul.f32 %v781_v63, %v773_v11  ;;  %v789_v16 = vmul.f32 %v785_v0, %v774_v12 }
 0x241   : > { %v790_v17 = vadd.f32 %v788_v15, %v766_v13  ;;  %v791_v18 = vadd.f32 %v789_v16, %v767_v14 }
 0x243   : > { %v1104_v20 = vmul.f32 -1.442695, %v790_v17  ;;  %v1105_v22 = vmul.f32 -1.442695, %v791_v18 }
 0x245   : > { %1187 = vpow2.f32 %v1104_v20 }
 0x246   : > { %1189 = vpow2.f32 %v1105_v22 }
 0x252   : > { %v1188_v44 = vpop.eup %1187 }
 0x253   : > { %v1190_v23 = vpop.eup %1189  ;;  %v798_v24 = vadd.f32 1.0, %v1188_v44 }
 0x254   : > { %v799_v25 = vadd.f32 1.0, %v1190_v23 }
 0x255   : > { %1191 = vrcp.f32 %v798_v24 }
 0x256   : > { %1193 = vrcp.f32 %v799_v25 }
 0x262   : > { %v1192_v26 = vpop.eup %1191 }
 0x263   : > { %v1194_v27 = vpop.eup %1193  ;;  %v807_v28 = vrot.slane %v1192_v26, %v1435_v43 }
 0x264   : > { %v811_v29 = vrot.slane %v1194_v27, %v1435_v43 }
 0x266   : > { %v814_v30 = vcombine.low %v807_v28, %v811_v29 }
 0x268   : > { %v816_v31 = vmul.f32 %v814_v30, %v1390_v5  ;;  %v831_v5 = vld [vmem:[%s1564_s6] sm:$0xf] }
 0x26a   : > { %v819_v32 = vcombine.high %v816_v31, %v816_v31  ;;  %v821_v33 = vsel %vm376_vm0, %v816_v31, 0.0 }
 0x26c   : > { %v822_v34 = vsel %vm376_vm0, %v819_v32, 0.0 }
 0x26d   : > { %v823_v35 = vadd.f32 %v822_v34, %v821_v33 }
 0x26f   : > { %824 = vadd.xlane.f32.xlu0 %v823_v35 }
 0x2f8   : > { %v825_v37 = vpop.xlane.xlu0 %824 }
 0x2f9   : > { %v826_v19 = vmul.f32 0.00390625, %v825_v37 }
 0x2fb   : > { %v830_v43 = vmul.f32 %v1106_v36, %v826_v19 }
 0x2fd   : > { %1124 = vmatpush3.msk.msra.mxu0 %vm376_vm0, %v830_v43 }
 0x2fe   : > { %1126 = vmatmul.mubr.msk.f32.vlgmr.msra.gmra.mxu0 %vm372_vm1, %v831_v5  ;;  %1128 = vmatprep.subr.mxu0 %v1261_v1 }
 0x2ff   : > { %1130 = vmatprep.mubr.msk.f32.mxu0 %vm1271_vm11, %v1261_v1  ;;  %v912_v1 = vld [vmem:[%s1567_s9] sm:$0xf] }
 0x3be   : > { %v905_v21 = vpop.f32.mrf.mxu0 }
 0x3bf   : > { %v906_v39 = vadd.f32 %v905_v21, %v832_v40 }
 0x3c0   : > { %v1127_v41 = vpop.f32.mrf.mxu0 }
 0x3c1   : > { %v909_v42 = vmax.f32 %v906_v39, 0.0 }
 0x3c3   : > { %v910_v45 = vmin.f32 %v909_v42, 6.0 }
 0x3c5   : > { %1129 = vmatpush3.msk.msra.mxu0 %vm376_vm0, %v910_v45 }
 0x3c6   : > { %1131 = vmatmul.mubr.msk.f32.vlgmr.msra.gmra.mxu0 %vm372_vm1, %v911_v46 }
 0x486   : > { %v985_v47 = vpop.f32.mrf.mxu0 }
 0x487   : > { %v986_v48 = vadd.f32 %v985_v47, %v912_v1 }
 0x488   : > { %v1132_v49 = vpop.f32.mrf.mxu0 }
 0x489   : > { %v1111_v50 = vmul.f32 -1.442695, %v986_v48 }
 0x48b   : > { %1195 = vpow2.f32 %v1111_v50 }
 0x498   : > { %v1196_v51 = vpop.eup %1195 }
 0x499   : > { %v992_v52 = vadd.f32 1.0, %v1196_v51 }
 0x49b   : > { %1197 = vrcp.f32 %v992_v52 }
 0x4a8   : > { %v1198_v53 = vpop.eup %1197 }
 0x4a9   : > { %998 = vperm.xlu1 %1185, %v1198_v53  }
 0x524   : > { %v999_v58 = vpop.permute.xlu1 %998 }
 0x525   : > { %v1006_v59 = vrot.slane %v999_v58, %v1005_v57 }
 0x527   : > { %v1008_v60 = vmul.f32 %v1006_v59, %v816_v31 }
 0x529   : > { %1009 = vst [vmem:[%s354_s28] sm:$0xff] %v1008_v60 }
 0x52a   : > { %1212 = shalt.err (!%p1209_p3)
}
 0x52b   : > { %s1213_s26 = scalar_lea.hbm %s1023_s12, 128  ;;  %s1217_s28 = scalar_lea.hbm %s1568_s10, 256 }
 0x52c   : > { %p1214_p4 = scmp.ne.s32.totalorder %s1023_s12, %s1213_s26  ;;  %p1218_p9 = scmp.lt.s32.totalorder %s1023_s12, %s1568_s10 }
 0x52d   : > { %p1219_p10 = scmp.lt.s32.totalorder %s1217_s28, %s1213_s26 }
 0x52e   : > { %p1215_p7 = pnand %p1214_p4, %p1370_p5 }
 0x52f   : > { %p1220_p11 = por %p1219_p10, %p1218_p9 }
 0x530   : > { %p1216_p8 = pneg %p1215_p7 }
 0x532   : > { %p1221_p12 = pnand %p1220_p11, %p1216_p8 }
 0x534   : > { %1224 = shalt.err (!%p1221_p12)
}
 0x535   : > { %1133 = dma.vmem_to_hbm [thread:$0]  (%p1370_p5), %s1026_s29, 128, %s1023_s12, %s1011_s13  }
 0x536 PF: > { %p1139_p13 = scmp.ge.s32.totalorder %s1259_s18, 2  ;;  %s1037_s14 = sand.u32 1, %s1247_s15  }
 0x537   : > { %s1038_s19 = scalar_lea.sflag [#allocation4], %s1037_s14 }
 0x538   : > { %p1136_p0 = pnand %p1139_p13, %p1374_p6 }
 0x53a   : > { %p1137_p1 = pneg %p1136_p0 }
 0x53c   : > { %1242 = dma.done.wait (%p1137_p1), %s1038_s19, 128  }
 0x53d   : > { %1244 = vsyncadd (%p1137_p1), %s1038_s19, 4294967168  ;;  %p22_p2 = scmp.ge.s32.totalorder %s1357_s20, 4   ;;  %s1571_s15 = smov %s1251_s16 }
 0x53e   : > { %s1572_s16 = smov %s1255_s17  ;;  %s1573_s17 = smov %s1368_s23 }
 0x53f   : > { %s1574_s18 = smov %s1357_s20  ;;  %24 = sbr.rel (!%p22_p2) target bundleno = 6 (0x6), region = 103 }
 0x544   :  { %1043 = vsyncpa [#allocation4], 1 }
 0x545   :  { %1045 = vsyncpa [#allocation4 + $0x1], 1 }

</bundles_post_ra>
